<compile_context>
chip_gen: v5e
topology: v5e:2x2
jax: 0.10.0
libtpu: 0.0.40
codegen_flags: <defaults>
</compile_context>

<pallas_src>
import math

import jax
import jax.numpy as jnp
from jax.experimental import pallas as pl
from jax.experimental.pallas import tpu as pltpu


def _round_up(x, m):
    return ((x + m - 1) // m) * m


def lmf_kernel(h_ref, w_ref, b_ref, o_ref):
    """Single invocation, everything VMEM-resident.

    h_ref : (modal, B, D)        stacked modality features (no ones column)
    w_ref : (modal, D, out_pad)  rank-pre-summed factors, lane-padded
    b_ref : (modal, 1, out_pad)  bias rows (last row of the summed factors), lane-padded
    o_ref : (B, out_pad)         fused output
    """
    modal = h_ref.shape[0]
    acc = None
    # Static unroll over the (small, fixed) number of modalities.
    for m in range(modal):
        z = jnp.dot(h_ref[m], w_ref[m], preferred_element_type=jnp.float32)  # (B, out_pad)
        z = z + b_ref[m]                                                      # broadcast (1, out_pad)
        acc = z if acc is None else acc * z
    o_ref[...] = acc


def prepare_params(factors):
    """One-time parameter preparation (do this at init, not per call).

    factors: list of (rank, D+1, out) f32 arrays.
    Returns (w, b, out_dim):
        w : (modal, D, out_pad)   sum over rank, bias row removed, lane-padded to 128
        b : (modal, 1, out_pad)   bias row, lane-padded to 128
    """
    f = jnp.stack(factors, axis=0)              # (modal, rank, D+1, out)
    w_full = jnp.sum(f, axis=1)                 # (modal, D+1, out)   sum_r F_r
    out_dim = w_full.shape[-1]
    out_pad = _round_up(out_dim, 128)
    pad = out_pad - out_dim

    w = w_full[:, :-1, :]                       # (modal, D, out)
    b = w_full[:, -1:, :]                       # (modal, 1, out)
    if pad:
        w = jnp.pad(w, ((0, 0), (0, 0), (0, pad)))
        b = jnp.pad(b, ((0, 0), (0, 0), (0, pad)))
    return w, b, out_dim


def lmf_forward(h_stacked, w, b, out_dim):
    """h_stacked: (modal, B, D) f32 (pre-stacked by the caller, once);
    w, b: prepared params from prepare_params()."""
    modal, batch, d = h_stacked.shape
    out_pad = w.shape[-1]

    flops = 2 * modal * batch * d * out_pad + 2 * modal * batch * out_pad
    bytes_accessed = 4 * (h_stacked.size + w.size + b.size + batch * out_pad)

    out = pl.pallas_call(
        lmf_kernel,
        out_shape=jax.ShapeDtypeStruct((batch, out_pad), jnp.float32),
        in_specs=[
            pl.BlockSpec(memory_space=pltpu.MemorySpace.VMEM),
            pl.BlockSpec(memory_space=pltpu.MemorySpace.VMEM),
            pl.BlockSpec(memory_space=pltpu.MemorySpace.VMEM),
        ],
        out_specs=pl.BlockSpec(memory_space=pltpu.MemorySpace.VMEM),
        cost_estimate=pl.CostEstimate(
            flops=flops, transcendentals=0, bytes_accessed=bytes_accessed),
    )(h_stacked, w, b)

    # Drop the lane padding (padded columns are exactly zero).
    return out[:, :out_dim]


def lmf_reference(h_list, factors):
    """Pure-JAX reference mirroring the PyTorch code path exactly."""
    batch = h_list[0].shape[0]
    out = None
    for h, f in zip(h_list, factors):
        h1 = jnp.concatenate([h, jnp.ones((batch, 1), h.dtype)], axis=1)  # (B, D+1)
        z = jnp.einsum("bd,rdo->rbo", h1, f)                              # (rank, B, out)
        z = jnp.sum(z, axis=0)                                            # (B, out)
        out = z if out is None else out * z
    return out


def xavier_normal_init(key, shape):
    """Matches torch.nn.init.xavier_normal for a 3-D tensor (rank, D+1, out)."""
    rank, dp1, out_dim = shape
    receptive = out_dim
    fan_in = dp1 * receptive
    fan_out = rank * receptive
    std = math.sqrt(2.0 / (fan_in + fan_out))
    return std * jax.random.normal(key, shape, dtype=jnp.float32)


if __name__ == "__main__":
    input_dim = 32
    output_dim = 16
    rank = 8
    modal = 4
    batch = 2   # batch > 1 so the torch .squeeze() is a no-op, as reproduced here
    # TODO(synk): post_fusion_dropout is declared but never applied in the PyTorch forward(); omitted.

    key = jax.random.PRNGKey(0)
    keys = jax.random.split(key, 2 * modal)

    h_list = [
        jax.random.normal(keys[i], (batch, input_dim), dtype=jnp.float32)
        for i in range(modal)
    ]
    factors = [
        xavier_normal_init(keys[modal + i], (rank, input_dim + 1, output_dim))
        for i in range(modal)
    ]

    # One-time prep (would live at module init in a real model).
    w, b, out_dim = prepare_params(factors)
    h_stacked = jnp.stack(h_list, axis=0)       # (modal, B, D), stacked once by the caller

    out = lmf_forward(h_stacked, w, b, out_dim)
    out = jax.block_until_ready(out)

    ref = lmf_reference(h_list, factors)
    assert out.shape == (batch, output_dim)
    assert jnp.allclose(out, ref, rtol=1e-4, atol=1e-4), "mismatch vs reference"

    print("KERNEL_OK")
</pallas_src>

<mosaic_0001>
module attributes {stable_mosaic.version = 11 : i64} {
  func.func @lmf_kernel(%arg0: memref<4x2x32xf32, #tpu.memory_space<vmem>>, %arg1: memref<4x32x128xf32, #tpu.memory_space<vmem>>, %arg2: memref<4x1x128xf32, #tpu.memory_space<vmem>>, %arg3: memref<2x128xf32, #tpu.memory_space<vmem>>) attributes {dimension_semantics = [], scalar_prefetch = 0 : i64, scratch_operands = 0 : i64, tpu.core_type = #tpu.core_type<tc>} {
    %c0 = arith.constant 0 : index
    %c0_0 = arith.constant 0 : index
    %c0_1 = arith.constant 0 : index
    %0 = vector.load %arg0[%c0, %c0_0, %c0_1] : memref<4x2x32xf32, #tpu.memory_space<vmem>>, vector<1x2x32xf32>
    %1 = vector.shape_cast %0 : vector<1x2x32xf32> to vector<2x32xf32>
    %c0_2 = arith.constant 0 : index
    %c0_3 = arith.constant 0 : index
    %c0_4 = arith.constant 0 : index
    %2 = vector.load %arg1[%c0_2, %c0_3, %c0_4] : memref<4x32x128xf32, #tpu.memory_space<vmem>>, vector<1x32x128xf32>
    %3 = vector.shape_cast %2 : vector<1x32x128xf32> to vector<32x128xf32>
    %cst = arith.constant dense<0.000000e+00> : vector<2x128xf32>
    %4 = tpu.matmul %1, %3, %cst {dimension_numbers = #tpu.dot_dimension_numbers<[1], [0], [0], [1], [0, 0, 1, 1], [], []>} : vector<2x32xf32>, vector<32x128xf32>, vector<2x128xf32> -> vector<2x128xf32>
    %c0_5 = arith.constant 0 : index
    %c0_6 = arith.constant 0 : index
    %c0_7 = arith.constant 0 : index
    %5 = vector.load %arg2[%c0_5, %c0_6, %c0_7] : memref<4x1x128xf32, #tpu.memory_space<vmem>>, vector<1x1x128xf32>
    %6 = vector.shape_cast %5 : vector<1x1x128xf32> to vector<1x128xf32>
    %7 = vector.broadcast %6 : vector<1x128xf32> to vector<2x128xf32>
    %8 = arith.addf %4, %7 : vector<2x128xf32>
    %c1 = arith.constant 1 : index
    %c0_8 = arith.constant 0 : index
    %c0_9 = arith.constant 0 : index
    %9 = vector.load %arg0[%c1, %c0_8, %c0_9] : memref<4x2x32xf32, #tpu.memory_space<vmem>>, vector<1x2x32xf32>
    %10 = vector.shape_cast %9 : vector<1x2x32xf32> to vector<2x32xf32>
    %c1_10 = arith.constant 1 : index
    %c0_11 = arith.constant 0 : index
    %c0_12 = arith.constant 0 : index
    %11 = vector.load %arg1[%c1_10, %c0_11, %c0_12] : memref<4x32x128xf32, #tpu.memory_space<vmem>>, vector<1x32x128xf32>
    %12 = vector.shape_cast %11 : vector<1x32x128xf32> to vector<32x128xf32>
    %cst_13 = arith.constant dense<0.000000e+00> : vector<2x128xf32>
    %13 = tpu.matmul %10, %12, %cst_13 {dimension_numbers = #tpu.dot_dimension_numbers<[1], [0], [0], [1], [0, 0, 1, 1], [], []>} : vector<2x32xf32>, vector<32x128xf32>, vector<2x128xf32> -> vector<2x128xf32>
    %c1_14 = arith.constant 1 : index
    %c0_15 = arith.constant 0 : index
    %c0_16 = arith.constant 0 : index
    %14 = vector.load %arg2[%c1_14, %c0_15, %c0_16] : memref<4x1x128xf32, #tpu.memory_space<vmem>>, vector<1x1x128xf32>
    %15 = vector.shape_cast %14 : vector<1x1x128xf32> to vector<1x128xf32>
    %16 = vector.broadcast %15 : vector<1x128xf32> to vector<2x128xf32>
    %17 = arith.addf %13, %16 : vector<2x128xf32>
    %18 = arith.mulf %8, %17 : vector<2x128xf32>
    %c2 = arith.constant 2 : index
    %c0_17 = arith.constant 0 : index
    %c0_18 = arith.constant 0 : index
    %19 = vector.load %arg0[%c2, %c0_17, %c0_18] : memref<4x2x32xf32, #tpu.memory_space<vmem>>, vector<1x2x32xf32>
    %20 = vector.shape_cast %19 : vector<1x2x32xf32> to vector<2x32xf32>
    %c2_19 = arith.constant 2 : index
    %c0_20 = arith.constant 0 : index
    %c0_21 = arith.constant 0 : index
    %21 = vector.load %arg1[%c2_19, %c0_20, %c0_21] : memref<4x32x128xf32, #tpu.memory_space<vmem>>, vector<1x32x128xf32>
    %22 = vector.shape_cast %21 : vector<1x32x128xf32> to vector<32x128xf32>
    %cst_22 = arith.constant dense<0.000000e+00> : vector<2x128xf32>
    %23 = tpu.matmul %20, %22, %cst_22 {dimension_numbers = #tpu.dot_dimension_numbers<[1], [0], [0], [1], [0, 0, 1, 1], [], []>} : vector<2x32xf32>, vector<32x128xf32>, vector<2x128xf32> -> vector<2x128xf32>
    %c2_23 = arith.constant 2 : index
    %c0_24 = arith.constant 0 : index
    %c0_25 = arith.constant 0 : index
    %24 = vector.load %arg2[%c2_23, %c0_24, %c0_25] : memref<4x1x128xf32, #tpu.memory_space<vmem>>, vector<1x1x128xf32>
    %25 = vector.shape_cast %24 : vector<1x1x128xf32> to vector<1x128xf32>
    %26 = vector.broadcast %25 : vector<1x128xf32> to vector<2x128xf32>
    %27 = arith.addf %23, %26 : vector<2x128xf32>
    %28 = arith.mulf %18, %27 : vector<2x128xf32>
    %c3 = arith.constant 3 : index
    %c0_26 = arith.constant 0 : index
    %c0_27 = arith.constant 0 : index
    %29 = vector.load %arg0[%c3, %c0_26, %c0_27] : memref<4x2x32xf32, #tpu.memory_space<vmem>>, vector<1x2x32xf32>
    %30 = vector.shape_cast %29 : vector<1x2x32xf32> to vector<2x32xf32>
    %c3_28 = arith.constant 3 : index
    %c0_29 = arith.constant 0 : index
    %c0_30 = arith.constant 0 : index
    %31 = vector.load %arg1[%c3_28, %c0_29, %c0_30] : memref<4x32x128xf32, #tpu.memory_space<vmem>>, vector<1x32x128xf32>
    %32 = vector.shape_cast %31 : vector<1x32x128xf32> to vector<32x128xf32>
    %cst_31 = arith.constant dense<0.000000e+00> : vector<2x128xf32>
    %33 = tpu.matmul %30, %32, %cst_31 {dimension_numbers = #tpu.dot_dimension_numbers<[1], [0], [0], [1], [0, 0, 1, 1], [], []>} : vector<2x32xf32>, vector<32x128xf32>, vector<2x128xf32> -> vector<2x128xf32>
    %c3_32 = arith.constant 3 : index
    %c0_33 = arith.constant 0 : index
    %c0_34 = arith.constant 0 : index
    %34 = vector.load %arg2[%c3_32, %c0_33, %c0_34] : memref<4x1x128xf32, #tpu.memory_space<vmem>>, vector<1x1x128xf32>
    %35 = vector.shape_cast %34 : vector<1x1x128xf32> to vector<1x128xf32>
    %36 = vector.broadcast %35 : vector<1x128xf32> to vector<2x128xf32>
    %37 = arith.addf %33, %36 : vector<2x128xf32>
    %38 = arith.mulf %28, %37 : vector<2x128xf32>
    %c0_35 = arith.constant 0 : index
    %c0_36 = arith.constant 0 : index
    %39 = vector.load %arg3[%c0_35, %c0_36] : memref<2x128xf32, #tpu.memory_space<vmem>>, vector<2x128xf32>
    tpu.vector_store %arg3[%c0_35, %c0_36], %38 {strides = array<i32>} : memref<2x128xf32, #tpu.memory_space<vmem>>, vector<2x128xf32>,
    return
  }
}

</mosaic_0001>

<bundles_post_ra>
// kernel: tpu_custom_call.1
= control target key start
LH: loop header
LB: loop body
LE: loop exit
PB: predicated region body
PF: predicated region fallthrough
CT: control target
= control target key end

     0   :  { %8 = vsyncpa [#allocation3], 0  ;;  %s388_s0 = inlined_call_operand.hbm [shape: f32[4,2,32], index: 0, kind: input, shape index: {}]   ;;  %s389_s1 = inlined_call_operand.hbm [shape: f32[4,32,128], index: 1, kind: input, shape index: {}]   ;;  %s390_s2 = inlined_call_operand.hbm [shape: f32[4,1,128], index: 2, kind: input, shape index: {}]   ;;  %s391_s3 = inlined_call_operand.hbm [shape: f32[2,128], index: 3, kind: output, shape index: {}]  }
   0x1   :  { %9 = vsyncpa [#allocation6], 0  ;;  %s28_s14 = sshll.u32 %s389_s1, 4  ;;  %s29_s14 = int_to_ptr.hbm [resolvable:$true] %s28_s14 }
   0x2   :  { %10 = vsyncpa [#allocation4], 0  ;;  %s342_s15 = smov [#allocation5]   ;;  %s15_s19 = sshll.u32 %s388_s0, 4  ;;  %s16_s19 = int_to_ptr.hbm [resolvable:$true] %s15_s19 }
   0x3   :  { %s30_s16 = sshll.u32 %s342_s15, 4  ;;  %s343_s20 = smov 128   ;;  %s31_s16 = int_to_ptr.vmem [resolvable:$true] %s30_s16 }
   0x4   :  { %s344_s21 = smov 8   ;;  %s345_s22 = smov [#allocation2]  }
   0x5   :  { %36 = dma.hbm_to_vmem [thread:$0]  %s29_s14, 2048, %s31_s16, [#allocation6], %s343_s20, %s343_s20, %s344_s21  }
   0x6   :  { %s17_s23 = sshll.u32 %s345_s22, 4  ;;  %s346_s24 = smov 32   ;;  %s18_s23 = int_to_ptr.vmem [resolvable:$true] %s17_s23 }
   0x7   :  { %s347_s25 = smov 2   ;;  %s41_s27 = sshll.u32 %s390_s2, 4  ;;  %s42_s27 = int_to_ptr.hbm [resolvable:$true] %s41_s27 }
   0x8   :  { %23 = dma.hbm_to_vmem [thread:$0]  %s16_s19, 128, %s18_s23, [#allocation3], %s346_s24, %s346_s24, %s347_s25  }
   0x9   :  { %s348_s28 = smov [#allocation7]   ;;  %s349_s30 = smov 16  }
   0xa   :  { %s43_s29 = sshll.u32 %s348_s28, 4  ;;  %s350_s0 = smov 1   ;;  %s44_s29 = int_to_ptr.vmem [resolvable:$true] %s43_s29 }
   0xb   :  { %49 = dma.hbm_to_vmem [thread:$0]  %s42_s27, 64, %s44_s29, [#allocation6], %s349_s30, %s349_s30, %s350_s0  }
   0xc   :  { %336 = dma.done.wait [#allocation3], 128  }
   0xd   :  { %337 = vsyncadd [#allocation3], 4294967168 }
   0xe   :  { %338 = dma.done.wait [#allocation6], 2112  }
   0xf   :  { %339 = vsyncadd [#allocation6], 4294965184  ;;  %v137_v0 = vld [vmem:[#allocation5 + $0x58] sm:$0xff]  ;;  %v136_v1 = vld [vmem:[#allocation5 + $0x50] sm:$0xff]  ;;  %vm71_vm0 = vcmask 261120   ;;  %s351_s2 = smov [#allocation8]  }
  0x10   :  { %v173_v2 = vld [vmem:[#allocation5 + $0x78] sm:$0xff]  ;;  %158 = vmatpush.msra.mxu2 %v137_v0  ;;  %v135_v5 = vld [vmem:[#allocation5 + $0x48] sm:$0xff]  ;;  %v172_v6 = vld [vmem:[#allocation5 + $0x70] sm:$0xff]  ;;  %s209_s4 = sshll.u32 %s351_s2, 4  ;;  %s211_s7 = sshll.u32 %s391_s3, 4  ;;  %s210_s4 = int_to_ptr.vmem [resolvable:$true] %s209_s4  ;;  %s212_s7 = int_to_ptr.hbm [resolvable:$true] %s211_s7 }
  0x11   :  { %194 = vmatpush.msra.mxu3 %v173_v2  ;;  %v66_v3 = vld [vmem:[#allocation5 + $0x18] sm:$0xff]  ;;  %v65_v7 = vld [vmem:[#allocation5 + $0x10] sm:$0xff]  ;;  %v134_v9 = vld [vmem:[#allocation5 + $0x40] sm:$0xff] }
  0x12   :  { %v101_v4 = vld [vmem:[#allocation5 + $0x38] sm:$0xff]  ;;  %87 = vmatpush.msra.mxu0 %v66_v3  ;;  %v100_v8 = vld [vmem:[#allocation5 + $0x30] sm:$0xff]  ;;  %159 = vmatpush.msra.mxu2 %v136_v1  ;;  %v171_v10 = vld [vmem:[#allocation5 + $0x68] sm:$0xff] }
  0x13   :  { %122 = vmatpush.msra.mxu1 %v101_v4  ;;  %195 = vmatpush.msra.mxu3 %v172_v6  ;;  %v64_v11 = vld [vmem:[#allocation5 + $0x8] sm:$0xff]  ;;  %v170_v13 = vld [vmem:[#allocation5 + $0x60] sm:$0xff]  ;;  %v132_v14 = vld [vmem:[#allocation2 + $0x4] sm:$0x3] }
  0x14   :  { %88 = vmatpush.msra.mxu0 %v65_v7  ;;  %v99_v12 = vld [vmem:[#allocation5 + $0x28] sm:$0xff]  ;;  %160 = vmatpush.msra.mxu2 %v135_v5  ;;  %v168_v15 = vld [vmem:[#allocation2 + $0x6] sm:$0x3]  ;;  %v63_v16 = vld [vmem:[#allocation5] sm:$0xff] }
  0x15   :  { %123 = vmatpush.msra.mxu1 %v100_v8  ;;  %196 = vmatpush.msra.mxu3 %v171_v10  ;;  %v98_v17 = vld [vmem:[#allocation5 + $0x20] sm:$0xff]  ;;  %v62_v18 = vld [vmem:[#allocation2] sm:$0x3]  ;;  %v96_v19 = vld [vmem:[#allocation2 + $0x2] sm:$0x3] }
  0x16   :  { %89 = vmatpush.msra.mxu0 %v64_v11  ;;  %161 = vmatpush.msra.mxu2 %v134_v9  ;;  %v236_v20 = vld [vmem:[#allocation7] ss:$0 sm:$0xff]  ;;  %v237_v21 = vld [vmem:[#allocation7 + $0x1] ss:$0 sm:$0xff]  ;;  %v238_v26 = vld [vmem:[#allocation7 + $0x2] ss:$0 sm:$0xff] }
  0x17   :  { %124 = vmatpush.msra.mxu1 %v99_v12  ;;  %197 = vmatpush.msra.mxu3 %v170_v13  ;;  %v239_v27 = vld [vmem:[#allocation7 + $0x3] ss:$0 sm:$0xff] }
  0x18   :  { %224 = vmatmul.msk.f32.vlgmr.msra.gmra.mxu2 %vm71_vm0, %v132_v14  ;;  %225 = vmatmul.msk.f32.vlgmr.msra.gmra.mxu3 %vm71_vm0, %v168_v15 }
  0x19   :  { %90 = vmatpush.msra.mxu0 %v63_v16  ;;  %125 = vmatpush.msra.mxu1 %v98_v17 }
  0x1a   :  { %222 = vmatmul.msk.f32.vlgmr.msra.gmra.mxu0 %vm71_vm0, %v62_v18  ;;  %223 = vmatmul.msk.f32.vlgmr.msra.gmra.mxu1 %vm71_vm0, %v96_v19 }
  0x97   :  { %v92_v22 = vpop.f32.mrf.mxu0  ;;  %v127_v23 = vpop.f32.mrf.mxu1 }
  0x98   :  { %v93_v24 = vadd.f32 %v236_v20, %v92_v22  ;;  %v128_v25 = vadd.f32 %v237_v21, %v127_v23 }
  0x9a   :  { %v130_v28 = vmul.f32 %v128_v25, %v93_v24 }
  0x9b   :  { %v163_v29 = vpop.f32.mrf.mxu2  ;;  %v199_v30 = vpop.f32.mrf.mxu3 }
  0x9c   :  { %v164_v31 = vadd.f32 %v238_v26, %v163_v29  ;;  %v200_v32 = vadd.f32 %v239_v27, %v199_v30 }
  0x9e   :  { %v166_v33 = vmul.f32 %v164_v31, %v130_v28 }
  0xa0   :  { %v202_v34 = vmul.f32 %v200_v32, %v166_v33 }
  0xa2   :  { %203 = vst [vmem:[#allocation8] sm:$0x3] %v202_v34 }
  0xa3   :  { %214 = dma.vmem_to_hbm [thread:$0]  %s210_s4, 32, %s212_s7, [#allocation4]  }
  0xa4   :  { %340 = dma.done.wait [#allocation4], 32  }
  0xa5   :  { %341 = vsyncadd [#allocation4], 4294967264 }
  0xa6   :  { %219 = vsyncpa [#allocation3], 1 }
  0xa7   :  { %220 = vsyncpa [#allocation6], 1 }
  0xa8   :  { %221 = vsyncpa [#allocation4], 1 }

</bundles_post_ra>
